<compile_context>
chip_gen: v6e
topology: v6e:2x2x1
jax: 0.10.0
libtpu: 0.0.40
codegen_flags: <defaults>
</compile_context>

<pallas_src>
import functools

import jax
import jax.numpy as jnp
from jax.experimental import pallas as pl
from jax.experimental.pallas import tpu as pltpu

LANE = 128     # lane width of a vreg (last dim)
SUBLANE = 8    # sublane width of a vreg (second-to-last dim)


def _round_up(x, m):
    return ((x + m - 1) // m) * m


def mlp_kernel(x_ref, w1_ref, b1_ref, w2_ref, b2_ref, o_ref):
    # Hidden layer: (TB, F) @ (F, Hp) on the MXU, accumulate in f32.
    h = jnp.dot(x_ref[...], w1_ref[...], preferred_element_type=jnp.float32)
    # Bias + tanh in f32 (EUP); padded hidden columns are tanh(0) == 0.
    h = jnp.tanh(h + b1_ref[...].astype(jnp.float32))
    # Dropout(p) in eval mode == identity.
    # Output layer: (TB, Hp) @ (Hp, Cp) + (1, Cp), accumulate in f32.
    h = h.astype(w2_ref.dtype)
    out = jnp.dot(h, w2_ref[...], preferred_element_type=jnp.float32)
    out = out + b2_ref[...].astype(jnp.float32)
    o_ref[...] = out.astype(o_ref.dtype)


@functools.partial(jax.jit, static_argnames=("block_b",))
def classifier_forward(x, w1, b1, w2, b2, *, block_b=512):
    """Pallas TPU forward pass of Classifier (inference).

    x  : (B, num_ftrs)
    w1 : (num_ftrs, hidden)   b1 : (1, hidden)
    w2 : (hidden, n_class)    b2 : (1, n_class)
    block_b: rows of x per grid step. 512 amortizes per-step overhead while
    keeping 2x(TB,F)+2x(TB,Cp) buffers well under the default scoped VMEM on
    all of v5e/v6e/v7x for realistic F; re-derive (smaller) for v7x's 64 MiB
    VMEM only if F is very large.
    """
    B, F = x.shape
    H = w1.shape[1]
    C = w2.shape[1]

    # --- Pad H and C to lane multiples (128) so stores/loads are lane-dense. ---
    Hp = _round_up(H, LANE)
    Cp = _round_up(C, LANE)
    w1p = jnp.pad(w1, ((0, 0), (0, Hp - H)))
    b1p = jnp.pad(b1, ((0, 0), (0, Hp - H)))
    w2p = jnp.pad(w2, ((0, Hp - H), (0, Cp - C)))
    b2p = jnp.pad(b2, ((0, 0), (0, Cp - C)))

    # --- Tile the batch axis; pad B so the grid divides evenly. ---
    TB = max(SUBLANE, min(block_b, _round_up(B, SUBLANE)))
    Bp = _round_up(B, TB)
    xp = jnp.pad(x, ((0, Bp - B), (0, 0)))

    itemsize = jnp.dtype(x.dtype).itemsize
    cost = pl.CostEstimate(
        flops=2 * Bp * (F * Hp + Hp * Cp),
        transcendentals=Bp * Hp,
        bytes_accessed=(
            Bp * F * itemsize                       # x stream
            + (F * Hp + Hp + Hp * Cp + Cp) * itemsize  # resident weights/biases
            + Bp * Cp * itemsize                    # output stream
        ),
    )

    out_padded = pl.pallas_call(
        mlp_kernel,
        out_shape=jax.ShapeDtypeStruct((Bp, Cp), x.dtype),
        grid_spec=pltpu.PrefetchScalarGridSpec(
            num_scalar_prefetch=0,
            grid=(Bp // TB,),
            in_specs=[
                pl.BlockSpec((TB, F), lambda i: (i, 0)),   # x: streamed per tile
                pl.BlockSpec((F, Hp), lambda i: (0, 0)),   # w1: VMEM-resident
                pl.BlockSpec((1, Hp), lambda i: (0, 0)),   # b1: VMEM-resident
                pl.BlockSpec((Hp, Cp), lambda i: (0, 0)),  # w2: VMEM-resident
                pl.BlockSpec((1, Cp), lambda i: (0, 0)),   # b2: VMEM-resident
            ],
            out_specs=pl.BlockSpec((TB, Cp), lambda i: (i, 0)),
        ),
        compiler_params=pltpu.CompilerParams(
            dimension_semantics=("parallel",),  # shard batch across TCs on v7x
        ),
        cost_estimate=cost,
    )(xp, w1p, b1p, w2p, b2p)

    return out_padded[:B, :C]


def init_params(key, num_ftrs, hidden_dim, n_class, dtype=jnp.float32):
    """Init mimicking PyTorch nn.Linear default (U(-1/sqrt(fan_in), +1/sqrt(fan_in)))."""
    k1, k2, k3, k4 = jax.random.split(key, 4)
    bound1 = 1.0 / float(num_ftrs) ** 0.5
    bound2 = 1.0 / float(hidden_dim) ** 0.5
    # Stored as (in, out) = transpose of PyTorch's (out, in) weight layout.
    w1 = jax.random.uniform(k1, (num_ftrs, hidden_dim), dtype, -bound1, bound1)
    b1 = jax.random.uniform(k2, (1, hidden_dim), dtype, -bound1, bound1)
    w2 = jax.random.uniform(k3, (hidden_dim, n_class), dtype, -bound2, bound2)
    b2 = jax.random.uniform(k4, (1, n_class), dtype, -bound2, bound2)
    return w1, b1, w2, b2


def reference_forward(x, w1, b1, w2, b2):
    xf, w1f, b1f = (a.astype(jnp.float32) for a in (x, w1, b1))
    w2f, b2f = (a.astype(jnp.float32) for a in (w2, b2))
    h = jnp.tanh(xf @ w1f + b1f)
    return h @ w2f + b2f


if __name__ == "__main__":
    key = jax.random.PRNGKey(0)
    kx, kp, kx2, kp2 = jax.random.split(key, 4)

    # --- Demo shapes implied by the module defaults: hidden_dim=8, small n_class ---
    batch, num_ftrs, hidden_dim, n_class = 2, 32, 8, 4
    x = jax.random.normal(kx, (batch, num_ftrs), jnp.float32)
    w1, b1, w2, b2 = init_params(kp, num_ftrs, hidden_dim, n_class)

    out = jax.block_until_ready(classifier_forward(x, w1, b1, w2, b2))
    ref = reference_forward(x, w1, b1, w2, b2)
    assert out.shape == (batch, n_class), out.shape
    assert jnp.allclose(out, ref, atol=1e-5, rtol=1e-5)

    # --- Larger batch exercising the multi-tile (grid > 1) streaming path ---
    B2, F2 = 1024, 256
    x2 = jax.random.normal(kx2, (B2, F2), jnp.float32)
    p2 = init_params(kp2, F2, hidden_dim, n_class)
    out2 = jax.block_until_ready(classifier_forward(x2, *p2))
    ref2 = reference_forward(x2, *p2)
    assert out2.shape == (B2, n_class)
    assert jnp.allclose(out2, ref2, atol=1e-4, rtol=1e-4)

    # --- bf16 storage path (halves HBM traffic; f32 accumulation inside kernel) ---
    xb = x2.astype(jnp.bfloat16)
    pb = tuple(p.astype(jnp.bfloat16) for p in p2)
    outb = jax.block_until_ready(classifier_forward(xb, *pb))
    refb = reference_forward(xb, *pb)
    assert outb.shape == (B2, n_class)
    assert jnp.allclose(outb.astype(jnp.float32), refb, atol=5e-2, rtol=5e-2)

    print("KERNEL_OK")
</pallas_src>

<mosaic_0001>
module attributes {stable_mosaic.version = 11 : i64} {
  func.func @mlp_kernel(%arg0: i32, %arg1: memref<8x32xf32, #tpu.memory_space<vmem>>, %arg2: memref<32x128xf32, #tpu.memory_space<vmem>>, %arg3: memref<1x128xf32, #tpu.memory_space<vmem>>, %arg4: memref<128x128xf32, #tpu.memory_space<vmem>>, %arg5: memref<1x128xf32, #tpu.memory_space<vmem>>, %arg6: memref<8x128xf32, #tpu.memory_space<vmem>>) attributes {dimension_semantics = [#tpu.dimension_semantics<parallel>], iteration_bounds = array<i64: 1>, scalar_prefetch = 0 : i64, scratch_operands = 0 : i64, tpu.core_type = #tpu.core_type<tc>, window_params = [{transform_indices = @transform_0, window_bounds = array<i64: 8, 32>}, {pipeline_mode = #tpu.pipeline_mode<synchronous>, transform_indices = @transform_1, window_bounds = array<i64: 32, 128>}, {pipeline_mode = #tpu.pipeline_mode<synchronous>, transform_indices = @transform_2, window_bounds = array<i64: 1, 128>}, {pipeline_mode = #tpu.pipeline_mode<synchronous>, transform_indices = @transform_3, window_bounds = array<i64: 128, 128>}, {pipeline_mode = #tpu.pipeline_mode<synchronous>, transform_indices = @transform_4, window_bounds = array<i64: 1, 128>}, {transform_indices = @transform_5, window_bounds = array<i64: 8, 128>}]} {
    %c0 = arith.constant 0 : index
    %c0_0 = arith.constant 0 : index
    %0 = vector.load %arg1[%c0, %c0_0] : memref<8x32xf32, #tpu.memory_space<vmem>>, vector<8x32xf32>
    %c0_1 = arith.constant 0 : index
    %c0_2 = arith.constant 0 : index
    %1 = vector.load %arg2[%c0_1, %c0_2] : memref<32x128xf32, #tpu.memory_space<vmem>>, vector<32x128xf32>
    %cst = arith.constant dense<0.000000e+00> : vector<8x128xf32>
    %2 = tpu.matmul %0, %1, %cst {dimension_numbers = #tpu.dot_dimension_numbers<[1], [0], [0], [1], [0, 0, 1, 1], [], []>} : vector<8x32xf32>, vector<32x128xf32>, vector<8x128xf32> -> vector<8x128xf32>
    %c0_3 = arith.constant 0 : index
    %c0_4 = arith.constant 0 : index
    %3 = vector.load %arg3[%c0_3, %c0_4] : memref<1x128xf32, #tpu.memory_space<vmem>>, vector<1x128xf32>
    %4 = vector.broadcast %3 : vector<1x128xf32> to vector<8x128xf32>
    %5 = arith.addf %2, %4 : vector<8x128xf32>
    %6 = math.tanh %5 : vector<8x128xf32>
    %c0_5 = arith.constant 0 : index
    %c0_6 = arith.constant 0 : index
    %7 = vector.load %arg4[%c0_5, %c0_6] : memref<128x128xf32, #tpu.memory_space<vmem>>, vector<128x128xf32>
    %cst_7 = arith.constant dense<0.000000e+00> : vector<8x128xf32>
    %8 = tpu.matmul %6, %7, %cst_7 {dimension_numbers = #tpu.dot_dimension_numbers<[1], [0], [0], [1], [0, 0, 1, 1], [], []>} : vector<8x128xf32>, vector<128x128xf32>, vector<8x128xf32> -> vector<8x128xf32>
    %c0_8 = arith.constant 0 : index
    %c0_9 = arith.constant 0 : index
    %9 = vector.load %arg5[%c0_8, %c0_9] : memref<1x128xf32, #tpu.memory_space<vmem>>, vector<1x128xf32>
    %10 = vector.broadcast %9 : vector<1x128xf32> to vector<8x128xf32>
    %11 = arith.addf %8, %10 : vector<8x128xf32>
    %c0_10 = arith.constant 0 : index
    %c0_11 = arith.constant 0 : index
    %12 = vector.load %arg6[%c0_10, %c0_11] : memref<8x128xf32, #tpu.memory_space<vmem>>, vector<8x128xf32>
    tpu.vector_store %arg6[%c0_10, %c0_11], %11 {strides = array<i32>} : memref<8x128xf32, #tpu.memory_space<vmem>>, vector<8x128xf32>,
    return
  }
  func.func @transform_0(%arg0: i32) -> (i32, i32) {
    %c0_i32 = arith.constant 0 : i32
    %c0_i32_0 = arith.constant 0 : i32
    return %arg0, %c0_i32 : i32, i32
  }
  func.func @transform_1(%arg0: i32) -> (i32, i32) {
    %c0_i32 = arith.constant 0 : i32
    %c0_i32_0 = arith.constant 0 : i32
    %c0_i32_1 = arith.constant 0 : i32
    return %c0_i32, %c0_i32_0 : i32, i32
  }
  func.func @transform_2(%arg0: i32) -> (i32, i32) {
    %c0_i32 = arith.constant 0 : i32
    %c0_i32_0 = arith.constant 0 : i32
    %c0_i32_1 = arith.constant 0 : i32
    return %c0_i32, %c0_i32_0 : i32, i32
  }
  func.func @transform_3(%arg0: i32) -> (i32, i32) {
    %c0_i32 = arith.constant 0 : i32
    %c0_i32_0 = arith.constant 0 : i32
    %c0_i32_1 = arith.constant 0 : i32
    return %c0_i32, %c0_i32_0 : i32, i32
  }
  func.func @transform_4(%arg0: i32) -> (i32, i32) {
    %c0_i32 = arith.constant 0 : i32
    %c0_i32_0 = arith.constant 0 : i32
    %c0_i32_1 = arith.constant 0 : i32
    return %c0_i32, %c0_i32_0 : i32, i32
  }
  func.func @transform_5(%arg0: i32) -> (i32, i32) {
    %c0_i32 = arith.constant 0 : i32
    %c0_i32_0 = arith.constant 0 : i32
    return %arg0, %c0_i32 : i32, i32
  }
}

</mosaic_0001>

<bundles_post_ra>
// kernel: classifier_forward.1
= control target key start
LH: loop header
LB: loop body
LE: loop exit
PB: predicated region body
PF: predicated region fallthrough
CT: control target
= control target key end

     0   :  { %v280_v0 = vmov 0.0   ;;  %vm281_vm0 = vmmov 0   ;;  %vm32_vm1 = vcmask 261120   ;;  %s408_s1 = inlined_call_operand.vmem [shape: f32[32,128], index: 1, kind: input, shape index: {}]   ;;  %s409_s3 = inlined_call_operand.vmem [shape: f32[128,128], index: 3, kind: input, shape index: {}]   ;;  %s410_s0 = inlined_call_operand.vmem [shape: f32[8,32], index: 0, kind: input, shape index: {}]   ;;  %s411_s2 = inlined_call_operand.vmem [shape: f32[1,128], index: 2, kind: input, shape index: {}]   ;;  %s412_s4 = inlined_call_operand.vmem [shape: f32[1,128], index: 4, kind: input, shape index: {}]   ;;  %s413_s5 = inlined_call_operand.vmem [shape: f32[8,128], index: 5, kind: output, shape index: {}]  }
   0x1   :  { %230 = vmatprep.subr.mxu0 %v280_v0  ;;  %v24_v1 = vld [vmem:[%s408_s1 + $0x18] sm:$0xff]  ;;  %v23_v2 = vld [vmem:[%s408_s1 + $0x10] sm:$0xff]  ;;  %238 = vmatprep.mubr.msk.f32.mxu0 %vm281_vm0, %v280_v0  ;;  %v22_v4 = vld [vmem:[%s408_s1 + $0x8] sm:$0xff] }
   0x2   :  { %231 = vmatpush3.msra.mxu0 %v24_v1  ;;  %241 = vmatprep.subr.mxu1 %v280_v0  ;;  %v122_v3 = vld [vmem:[%s409_s3 + $0x78] sm:$0xff]  ;;  %v121_v5 = vld [vmem:[%s409_s3 + $0x70] sm:$0xff]  ;;  %v120_v6 = vld [vmem:[%s409_s3 + $0x68] sm:$0xff] }
   0x3   :  { %232 = vmatprep.subr.mxu0 %v280_v0  ;;  %242 = vmatpush3.msra.mxu1 %v122_v3  ;;  %v21_v7 = vld [vmem:[%s408_s1] sm:$0xff]  ;;  %v118_v10 = vld [vmem:[%s409_s3 + $0x58] sm:$0xff]  ;;  %v117_v11 = vld [vmem:[%s409_s3 + $0x50] sm:$0xff] }
   0x4   :  { %233 = vmatpush3.msra.mxu0 %v23_v2  ;;  %243 = vmatprep.subr.mxu1 %v280_v0  ;;  %v20_v8 = vld [vmem:[%s410_s0] sm:$0xff]  ;;  %v116_v12 = vld [vmem:[%s409_s3 + $0x48] sm:$0xff]  ;;  %v114_v14 = vld [vmem:[%s409_s3 + $0x38] sm:$0xff] }
   0x5   :  { %234 = vmatprep.subr.mxu0 %v280_v0  ;;  %244 = vmatpush3.msra.mxu1 %v121_v5  ;;  %v119_v9 = vld [vmem:[%s409_s3 + $0x60] sm:$0xff]  ;;  %v113_v15 = vld [vmem:[%s409_s3 + $0x30] sm:$0xff]  ;;  %v112_v16 = vld [vmem:[%s409_s3 + $0x28] sm:$0xff] }
   0x6   :  { %235 = vmatpush3.msra.mxu0 %v22_v4  ;;  %245 = vmatprep.subr.mxu1 %v280_v0  ;;  %v115_v13 = vld [vmem:[%s409_s3 + $0x40] sm:$0xff]  ;;  %v110_v18 = vld [vmem:[%s409_s3 + $0x18] sm:$0xff]  ;;  %v109_v19 = vld [vmem:[%s409_s3 + $0x10] sm:$0xff] }
   0x7   :  { %236 = vmatprep.subr.mxu0 %v280_v0  ;;  %246 = vmatpush3.msra.mxu1 %v120_v6  ;;  %v111_v17 = vld [vmem:[%s409_s3 + $0x20] sm:$0xff]  ;;  %v108_v20 = vld [vmem:[%s409_s3 + $0x8] sm:$0xff] }
   0x8   :  { %237 = vmatpush3.msra.mxu0 %v21_v7  ;;  %247 = vmatprep.subr.mxu1 %v280_v0  ;;  %v107_v21 = vld [vmem:[%s409_s3] sm:$0xff] }
   0x9   :  { %239 = vmatmul.mubr.msk.f32.vlgmr.msra.gmra.mxu0 %vm32_vm1, %v20_v8  ;;  %248 = vmatpush3.msra.mxu1 %v119_v9  ;;  %v205_v22 = vld [vmem:[%s411_s2] ss:$0 sm:$0xff] }
   0xa   :  { %249 = vmatprep.subr.mxu1 %v280_v0  ;;  %273 = vmatprep.mubr.msk.f32.mxu1 %vm281_vm0, %v280_v0  ;;  %v207_v27 = vld [vmem:[%s412_s4] ss:$0 sm:$0xff] }
   0xb   :  { %250 = vmatpush3.msra.mxu1 %v118_v10 }
   0xc   :  { %251 = vmatprep.subr.mxu1 %v280_v0 }
   0xd   :  { %252 = vmatpush3.msra.mxu1 %v117_v11 }
   0xe   :  { %253 = vmatprep.subr.mxu1 %v280_v0 }
   0xf   :  { %254 = vmatpush3.msra.mxu1 %v116_v12 }
  0x10   :  { %255 = vmatprep.subr.mxu1 %v280_v0 }
  0x11   :  { %256 = vmatpush3.msra.mxu1 %v115_v13 }
  0x12   :  { %257 = vmatprep.subr.mxu1 %v280_v0 }
  0x13   :  { %258 = vmatpush3.msra.mxu1 %v114_v14 }
  0x14   :  { %259 = vmatprep.subr.mxu1 %v280_v0 }
  0x15   :  { %260 = vmatpush3.msra.mxu1 %v113_v15 }
  0x16   :  { %261 = vmatprep.subr.mxu1 %v280_v0 }
  0x17   :  { %262 = vmatpush3.msra.mxu1 %v112_v16 }
  0x18   :  { %263 = vmatprep.subr.mxu1 %v280_v0 }
  0x19   :  { %264 = vmatpush3.msra.mxu1 %v111_v17 }
  0x1a   :  { %265 = vmatprep.subr.mxu1 %v280_v0 }
  0x1b   :  { %266 = vmatpush3.msra.mxu1 %v110_v18 }
  0x1c   :  { %267 = vmatprep.subr.mxu1 %v280_v0 }
  0x1d   :  { %268 = vmatpush3.msra.mxu1 %v109_v19 }
  0x1e   :  { %269 = vmatprep.subr.mxu1 %v280_v0 }
  0x1f   :  { %270 = vmatpush3.msra.mxu1 %v108_v20 }
  0x20   :  { %271 = vmatprep.subr.mxu1 %v280_v0 }
  0x21   :  { %272 = vmatpush3.msra.mxu1 %v107_v21 }
  0xc9   :  { %v102_v23 = vpop.f32.mrf.mxu0 }
  0xca   :  { %v103_v24 = vadd.f32 %v205_v22, %v102_v23 }
  0xcb   :  { %v240_v25 = vpop.f32.mrf.mxu0 }
  0xcc   :  { %278 = vtanh.f32 %v103_v24 }
  0xd9   :  { %v279_v26 = vpop.eup %278 }
  0xda   :  { %274 = vmatmul.mubr.f32.vlgmr.msra.gmra.mxu1 %v279_v26 }
 0x19a   :  { %v196_v28 = vpop.f32.mrf.mxu1 }
 0x19b   :  { %v197_v29 = vadd.f32 %v207_v27, %v196_v28 }
 0x19c   :  { %v275_v30 = vpop.f32.mrf.mxu1 }
 0x19d   :  { %200 = vst [vmem:[%s413_s5] sm:$0xff] %v197_v29 }

</bundles_post_ra>
